<compile_context>
chip_gen: v5e
topology: v5e:2x2
jax: 0.10.0
libtpu: 0.0.40
codegen_flags: <defaults>
</compile_context>

<pallas_src>
import functools

import jax
import jax.numpy as jnp
import numpy as np
from jax.experimental import pallas as pl
from jax.experimental.pallas import tpu as pltpu


def _default_tile_b():
    """Generation-aware default tile (samples per grid step)."""
    kind = ""
    try:
        kind = jax.devices()[0].device_kind.lower()
    except Exception:  # pragma: no cover - defensive
        pass
    if ("v6" in kind) or ("v7" in kind):
        # double-buffered in+out ~= 24 MiB < 32 MiB scoped default (v6e/v7x)
        return 524288
    # conservative default (v5e 16 MiB scoped default -> ~12 MiB double-buffered)
    return 262144


def _pick_tile_b(b_pad, requested):
    if requested is None:
        requested = _default_tile_b()
    # multiple of 1024 so tc = tile_b // 8 is a multiple of 128 lanes
    tile = max(1024, (int(requested) // 1024) * 1024)
    tile = min(tile, b_pad)  # never larger than the (lane-aligned) data
    # keep >= ~8 grid steps so megacore sharding / pipelining stays busy
    tile = min(tile, max(1024, ((b_pad // 8) // 1024) * 1024))
    return tile


def _make_kernel(signs):
    """signs: static tuple of 5 bools, True where w2[j] >= 0."""

    def kernel(p_ref, x_ref, o_ref):
        # p_ref: (8, 8) f32 in SMEM.
        #   p[0:5, 0:5] = W1 * w2 (folded, (in, out)); p[5, 0:5] = b1 * w2;
        #   p[7, 0] = b2.
        # x_ref: (5, 8, Tc) f32 (feature, sublane, lane); o_ref: (8, Tc) f32.
        xs = [x_ref[i] for i in range(5)]  # hoist feature loads (5, not 25)
        z = None
        for j in range(5):
            acc = xs[0] * p_ref[0, j]
            for i in range(1, 5):
                acc = acc + xs[i] * p_ref[i, j]
            acc = acc + p_ref[5, j]
            # relu(pre_j) * w2_j with w2_j folded into the weights:
            # sign-aware clamp selected at pack time (no per-sample multiply).
            t = jnp.maximum(acc, 0.0) if signs[j] else jnp.minimum(acc, 0.0)
            z = t if z is None else z + t
        z = z + p_ref[7, 0]  # fc2 bias
        o_ref[...] = jax.nn.sigmoid(z).astype(o_ref.dtype)

    return kernel


def pack_params(w1, b1, w2, b2):
    """Pack + fold parameters (run eagerly / at 'pack time', not under jit).

    w1: (5, 5) stored (in, out); b1: (1, 5) or (5,); w2: (5, 1) or (5,); b2: scalar.
    Returns (params (8, 8) f32, signs tuple of 5 bools).
    """
    w1 = jnp.asarray(w1, jnp.float32).reshape(5, 5)
    b1 = jnp.asarray(b1, jnp.float32).reshape(5)
    w2 = jnp.asarray(w2, jnp.float32).reshape(5)
    b2 = jnp.asarray(b2, jnp.float32).reshape(())
    signs = tuple(bool(v) for v in (np.asarray(w2) >= 0.0))
    p = jnp.zeros((8, 8), jnp.float32)
    p = p.at[0:5, 0:5].set(w1 * w2[None, :])  # fold fc2 weight into fc1 weight
    p = p.at[5, 0:5].set(b1 * w2)             # fold fc2 weight into fc1 bias
    p = p.at[7, 0].set(b2)
    return p, signs


def _forward_core(x_fm, params, signs, tile_b):
    """x_fm: (5, B) f32 feature-major. Returns (B, 1) f32."""
    B = x_fm.shape[1]
    b_pad = pl.cdiv(B, 1024) * 1024          # lane alignment only
    n_cols = b_pad // 8
    tile_b = _pick_tile_b(b_pad, tile_b)
    tc = tile_b // 8
    grid = (pl.cdiv(n_cols, tc),)            # partial final block is masked by Pallas

    # Pure reshape for feature-major input (no transpose pass): b = s*n_cols + c.
    x_r = jnp.pad(x_fm, ((0, 0), (0, b_pad - B))).reshape(5, 8, n_cols)

    out = pl.pallas_call(
        _make_kernel(signs),
        out_shape=jax.ShapeDtypeStruct((8, n_cols), jnp.float32),
        grid=grid,
        in_specs=[
            pl.BlockSpec(memory_space=pltpu.SMEM),          # packed params
            pl.BlockSpec((5, 8, tc), lambda i: (0, 0, i)),   # x tiles, batch on lanes
        ],
        out_specs=pl.BlockSpec((8, tc), lambda i: (0, i)),   # lane-dense output slab
        compiler_params=pltpu.CompilerParams(
            dimension_semantics=("parallel",),
            # Let XLA fold the wrapper-side cast/transpose/pad into the x operand.
            allow_input_fusion=[False, True],
        ),
        cost_estimate=pl.CostEstimate(
            flops=60 * b_pad,
            transcendentals=b_pad,
            bytes_accessed=24 * b_pad + 256,
        ),
    )(params, x_r)

    # Row-major (8, n_cols) is exactly b = s*n_cols + c.
    return out.reshape(b_pad)[:B].reshape(B, 1)


@functools.partial(jax.jit, static_argnames=("signs", "tile_b"))
def patient_risk_forward(x, params, *, signs, tile_b=None):
    """x: (B, 5) (PyTorch layout). The whole relayout fuses inside this jit."""
    return _forward_core(x.astype(jnp.float32).T, params, signs, tile_b)


@functools.partial(jax.jit, static_argnames=("signs", "tile_b"))
def patient_risk_forward_feature_major(x_fm, params, *, signs, tile_b=None):
    """x_fm: (5, B) feature-major — preferred producer layout (no transpose)."""
    return _forward_core(x_fm.astype(jnp.float32), params, signs, tile_b)


def init_params(key):
    """Deterministic init mimicking nn.Linear (uniform(-1/sqrt(fan_in), +))."""
    k1, k2, k3, k4 = jax.random.split(key, 4)
    bound = 1.0 / jnp.sqrt(5.0)
    # stored (in, out) — transposed relative to PyTorch's (out, in)
    w1 = jax.random.uniform(k1, (5, 5), jnp.float32, -bound, bound)
    b1 = jax.random.uniform(k2, (1, 5), jnp.float32, -bound, bound)
    w2 = jax.random.uniform(k3, (5, 1), jnp.float32, -bound, bound)
    b2 = jax.random.uniform(k4, (1, 1), jnp.float32, -bound, bound)
    return w1, b1, w2, b2


if __name__ == "__main__":
    key = jax.random.PRNGKey(0)
    kx, kp = jax.random.split(key)
    B = 8
    x = jax.random.normal(kx, (B, 5), jnp.float32)
    w1, b1, w2, b2 = init_params(kp)
    params, signs = pack_params(w1, b1, w2, b2)

    out = jax.block_until_ready(patient_risk_forward(x, params, signs=signs))

    # sanity check against plain-JAX reference (same math as the PyTorch module)
    ref = jax.nn.sigmoid(jnp.maximum(x @ w1 + b1, 0.0) @ w2 + b2)
    assert out.shape == (B, 1)
    assert jnp.allclose(out, ref, atol=1e-5), "mismatch vs reference"

    # feature-major entry point (zero-relayout path) must agree as well
    out_fm = jax.block_until_ready(
        patient_risk_forward_feature_major(x.T, params, signs=signs))
    assert jnp.allclose(out_fm, ref, atol=1e-5), "feature-major mismatch"

    print("KERNEL_OK")
</pallas_src>

<mosaic_0001>
module attributes {stable_mosaic.version = 11 : i64} {
  func.func @kernel(%arg0: i32, %arg1: memref<8x8xf32, #tpu.memory_space<smem>>, %arg2: memref<5x8x128xf32, #tpu.memory_space<vmem>>, %arg3: memref<8x128xf32, #tpu.memory_space<vmem>>) attributes {dimension_semantics = [#tpu.dimension_semantics<parallel>], iteration_bounds = array<i64: 1>, scalar_prefetch = 0 : i64, scratch_operands = 0 : i64, tpu.core_type = #tpu.core_type<tc>, window_params = [{transform_indices = @transform_0, window_bounds = array<i64: 8, 8>}, {transform_indices = @transform_1, window_bounds = array<i64: 5, 8, 128>}, {transform_indices = @transform_2, window_bounds = array<i64: 8, 128>}]} {
    %c0 = arith.constant 0 : index
    %c0_0 = arith.constant 0 : index
    %c0_1 = arith.constant 0 : index
    %0 = vector.load %arg2[%c0, %c0_0, %c0_1] : memref<5x8x128xf32, #tpu.memory_space<vmem>>, vector<1x8x128xf32>
    %1 = vector.shape_cast %0 : vector<1x8x128xf32> to vector<8x128xf32>
    %c1 = arith.constant 1 : index
    %c0_2 = arith.constant 0 : index
    %c0_3 = arith.constant 0 : index
    %2 = vector.load %arg2[%c1, %c0_2, %c0_3] : memref<5x8x128xf32, #tpu.memory_space<vmem>>, vector<1x8x128xf32>
    %3 = vector.shape_cast %2 : vector<1x8x128xf32> to vector<8x128xf32>
    %c2 = arith.constant 2 : index
    %c0_4 = arith.constant 0 : index
    %c0_5 = arith.constant 0 : index
    %4 = vector.load %arg2[%c2, %c0_4, %c0_5] : memref<5x8x128xf32, #tpu.memory_space<vmem>>, vector<1x8x128xf32>
    %5 = vector.shape_cast %4 : vector<1x8x128xf32> to vector<8x128xf32>
    %c3 = arith.constant 3 : index
    %c0_6 = arith.constant 0 : index
    %c0_7 = arith.constant 0 : index
    %6 = vector.load %arg2[%c3, %c0_6, %c0_7] : memref<5x8x128xf32, #tpu.memory_space<vmem>>, vector<1x8x128xf32>
    %7 = vector.shape_cast %6 : vector<1x8x128xf32> to vector<8x128xf32>
    %c4 = arith.constant 4 : index
    %c0_8 = arith.constant 0 : index
    %c0_9 = arith.constant 0 : index
    %8 = vector.load %arg2[%c4, %c0_8, %c0_9] : memref<5x8x128xf32, #tpu.memory_space<vmem>>, vector<1x8x128xf32>
    %9 = vector.shape_cast %8 : vector<1x8x128xf32> to vector<8x128xf32>
    %c0_10 = arith.constant 0 : index
    %c0_11 = arith.constant 0 : index
    %10 = memref.load %arg1[%c0_10, %c0_11] : memref<8x8xf32, #tpu.memory_space<smem>>
    %11 = vector.broadcast %10 : f32 to vector<8x128xf32>
    %12 = arith.mulf %1, %11 : vector<8x128xf32>
    %c1_12 = arith.constant 1 : index
    %c0_13 = arith.constant 0 : index
    %13 = memref.load %arg1[%c1_12, %c0_13] : memref<8x8xf32, #tpu.memory_space<smem>>
    %14 = vector.broadcast %13 : f32 to vector<8x128xf32>
    %15 = arith.mulf %3, %14 : vector<8x128xf32>
    %16 = arith.addf %12, %15 : vector<8x128xf32>
    %c2_14 = arith.constant 2 : index
    %c0_15 = arith.constant 0 : index
    %17 = memref.load %arg1[%c2_14, %c0_15] : memref<8x8xf32, #tpu.memory_space<smem>>
    %18 = vector.broadcast %17 : f32 to vector<8x128xf32>
    %19 = arith.mulf %5, %18 : vector<8x128xf32>
    %20 = arith.addf %16, %19 : vector<8x128xf32>
    %c3_16 = arith.constant 3 : index
    %c0_17 = arith.constant 0 : index
    %21 = memref.load %arg1[%c3_16, %c0_17] : memref<8x8xf32, #tpu.memory_space<smem>>
    %22 = vector.broadcast %21 : f32 to vector<8x128xf32>
    %23 = arith.mulf %7, %22 : vector<8x128xf32>
    %24 = arith.addf %20, %23 : vector<8x128xf32>
    %c4_18 = arith.constant 4 : index
    %c0_19 = arith.constant 0 : index
    %25 = memref.load %arg1[%c4_18, %c0_19] : memref<8x8xf32, #tpu.memory_space<smem>>
    %26 = vector.broadcast %25 : f32 to vector<8x128xf32>
    %27 = arith.mulf %9, %26 : vector<8x128xf32>
    %28 = arith.addf %24, %27 : vector<8x128xf32>
    %c5 = arith.constant 5 : index
    %c0_20 = arith.constant 0 : index
    %29 = memref.load %arg1[%c5, %c0_20] : memref<8x8xf32, #tpu.memory_space<smem>>
    %30 = vector.broadcast %29 : f32 to vector<8x128xf32>
    %31 = arith.addf %28, %30 : vector<8x128xf32>
    %cst = arith.constant 0.000000e+00 : f32
    %32 = vector.broadcast %cst : f32 to vector<8x128xf32>
    %33 = arith.maximumf %31, %32 : vector<8x128xf32>
    %c0_21 = arith.constant 0 : index
    %c1_22 = arith.constant 1 : index
    %34 = memref.load %arg1[%c0_21, %c1_22] : memref<8x8xf32, #tpu.memory_space<smem>>
    %35 = vector.broadcast %34 : f32 to vector<8x128xf32>
    %36 = arith.mulf %1, %35 : vector<8x128xf32>
    %c1_23 = arith.constant 1 : index
    %c1_24 = arith.constant 1 : index
    %37 = memref.load %arg1[%c1_23, %c1_24] : memref<8x8xf32, #tpu.memory_space<smem>>
    %38 = vector.broadcast %37 : f32 to vector<8x128xf32>
    %39 = arith.mulf %3, %38 : vector<8x128xf32>
    %40 = arith.addf %36, %39 : vector<8x128xf32>
    %c2_25 = arith.constant 2 : index
    %c1_26 = arith.constant 1 : index
    %41 = memref.load %arg1[%c2_25, %c1_26] : memref<8x8xf32, #tpu.memory_space<smem>>
    %42 = vector.broadcast %41 : f32 to vector<8x128xf32>
    %43 = arith.mulf %5, %42 : vector<8x128xf32>
    %44 = arith.addf %40, %43 : vector<8x128xf32>
    %c3_27 = arith.constant 3 : index
    %c1_28 = arith.constant 1 : index
    %45 = memref.load %arg1[%c3_27, %c1_28] : memref<8x8xf32, #tpu.memory_space<smem>>
    %46 = vector.broadcast %45 : f32 to vector<8x128xf32>
    %47 = arith.mulf %7, %46 : vector<8x128xf32>
    %48 = arith.addf %44, %47 : vector<8x128xf32>
    %c4_29 = arith.constant 4 : index
    %c1_30 = arith.constant 1 : index
    %49 = memref.load %arg1[%c4_29, %c1_30] : memref<8x8xf32, #tpu.memory_space<smem>>
    %50 = vector.broadcast %49 : f32 to vector<8x128xf32>
    %51 = arith.mulf %9, %50 : vector<8x128xf32>
    %52 = arith.addf %48, %51 : vector<8x128xf32>
    %c5_31 = arith.constant 5 : index
    %c1_32 = arith.constant 1 : index
    %53 = memref.load %arg1[%c5_31, %c1_32] : memref<8x8xf32, #tpu.memory_space<smem>>
    %54 = vector.broadcast %53 : f32 to vector<8x128xf32>
    %55 = arith.addf %52, %54 : vector<8x128xf32>
    %cst_33 = arith.constant 0.000000e+00 : f32
    %56 = vector.broadcast %cst_33 : f32 to vector<8x128xf32>
    %57 = arith.maximumf %55, %56 : vector<8x128xf32>
    %58 = arith.addf %33, %57 : vector<8x128xf32>
    %c0_34 = arith.constant 0 : index
    %c2_35 = arith.constant 2 : index
    %59 = memref.load %arg1[%c0_34, %c2_35] : memref<8x8xf32, #tpu.memory_space<smem>>
    %60 = vector.broadcast %59 : f32 to vector<8x128xf32>
    %61 = arith.mulf %1, %60 : vector<8x128xf32>
    %c1_36 = arith.constant 1 : index
    %c2_37 = arith.constant 2 : index
    %62 = memref.load %arg1[%c1_36, %c2_37] : memref<8x8xf32, #tpu.memory_space<smem>>
    %63 = vector.broadcast %62 : f32 to vector<8x128xf32>
    %64 = arith.mulf %3, %63 : vector<8x128xf32>
    %65 = arith.addf %61, %64 : vector<8x128xf32>
    %c2_38 = arith.constant 2 : index
    %c2_39 = arith.constant 2 : index
    %66 = memref.load %arg1[%c2_38, %c2_39] : memref<8x8xf32, #tpu.memory_space<smem>>
    %67 = vector.broadcast %66 : f32 to vector<8x128xf32>
    %68 = arith.mulf %5, %67 : vector<8x128xf32>
    %69 = arith.addf %65, %68 : vector<8x128xf32>
    %c3_40 = arith.constant 3 : index
    %c2_41 = arith.constant 2 : index
    %70 = memref.load %arg1[%c3_40, %c2_41] : memref<8x8xf32, #tpu.memory_space<smem>>
    %71 = vector.broadcast %70 : f32 to vector<8x128xf32>
    %72 = arith.mulf %7, %71 : vector<8x128xf32>
    %73 = arith.addf %69, %72 : vector<8x128xf32>
    %c4_42 = arith.constant 4 : index
    %c2_43 = arith.constant 2 : index
    %74 = memref.load %arg1[%c4_42, %c2_43] : memref<8x8xf32, #tpu.memory_space<smem>>
    %75 = vector.broadcast %74 : f32 to vector<8x128xf32>
    %76 = arith.mulf %9, %75 : vector<8x128xf32>
    %77 = arith.addf %73, %76 : vector<8x128xf32>
    %c5_44 = arith.constant 5 : index
    %c2_45 = arith.constant 2 : index
    %78 = memref.load %arg1[%c5_44, %c2_45] : memref<8x8xf32, #tpu.memory_space<smem>>
    %79 = vector.broadcast %78 : f32 to vector<8x128xf32>
    %80 = arith.addf %77, %79 : vector<8x128xf32>
    %cst_46 = arith.constant 0.000000e+00 : f32
    %81 = vector.broadcast %cst_46 : f32 to vector<8x128xf32>
    %82 = arith.minimumf %80, %81 : vector<8x128xf32>
    %83 = arith.addf %58, %82 : vector<8x128xf32>
    %c0_47 = arith.constant 0 : index
    %c3_48 = arith.constant 3 : index
    %84 = memref.load %arg1[%c0_47, %c3_48] : memref<8x8xf32, #tpu.memory_space<smem>>
    %85 = vector.broadcast %84 : f32 to vector<8x128xf32>
    %86 = arith.mulf %1, %85 : vector<8x128xf32>
    %c1_49 = arith.constant 1 : index
    %c3_50 = arith.constant 3 : index
    %87 = memref.load %arg1[%c1_49, %c3_50] : memref<8x8xf32, #tpu.memory_space<smem>>
    %88 = vector.broadcast %87 : f32 to vector<8x128xf32>
    %89 = arith.mulf %3, %88 : vector<8x128xf32>
    %90 = arith.addf %86, %89 : vector<8x128xf32>
    %c2_51 = arith.constant 2 : index
    %c3_52 = arith.constant 3 : index
    %91 = memref.load %arg1[%c2_51, %c3_52] : memref<8x8xf32, #tpu.memory_space<smem>>
    %92 = vector.broadcast %91 : f32 to vector<8x128xf32>
    %93 = arith.mulf %5, %92 : vector<8x128xf32>
    %94 = arith.addf %90, %93 : vector<8x128xf32>
    %c3_53 = arith.constant 3 : index
    %c3_54 = arith.constant 3 : index
    %95 = memref.load %arg1[%c3_53, %c3_54] : memref<8x8xf32, #tpu.memory_space<smem>>
    %96 = vector.broadcast %95 : f32 to vector<8x128xf32>
    %97 = arith.mulf %7, %96 : vector<8x128xf32>
    %98 = arith.addf %94, %97 : vector<8x128xf32>
    %c4_55 = arith.constant 4 : index
    %c3_56 = arith.constant 3 : index
    %99 = memref.load %arg1[%c4_55, %c3_56] : memref<8x8xf32, #tpu.memory_space<smem>>
    %100 = vector.broadcast %99 : f32 to vector<8x128xf32>
    %101 = arith.mulf %9, %100 : vector<8x128xf32>
    %102 = arith.addf %98, %101 : vector<8x128xf32>
    %c5_57 = arith.constant 5 : index
    %c3_58 = arith.constant 3 : index
    %103 = memref.load %arg1[%c5_57, %c3_58] : memref<8x8xf32, #tpu.memory_space<smem>>
    %104 = vector.broadcast %103 : f32 to vector<8x128xf32>
    %105 = arith.addf %102, %104 : vector<8x128xf32>
    %cst_59 = arith.constant 0.000000e+00 : f32
    %106 = vector.broadcast %cst_59 : f32 to vector<8x128xf32>
    %107 = arith.minimumf %105, %106 : vector<8x128xf32>
    %108 = arith.addf %83, %107 : vector<8x128xf32>
    %c0_60 = arith.constant 0 : index
    %c4_61 = arith.constant 4 : index
    %109 = memref.load %arg1[%c0_60, %c4_61] : memref<8x8xf32, #tpu.memory_space<smem>>
    %110 = vector.broadcast %109 : f32 to vector<8x128xf32>
    %111 = arith.mulf %1, %110 : vector<8x128xf32>
    %c1_62 = arith.constant 1 : index
    %c4_63 = arith.constant 4 : index
    %112 = memref.load %arg1[%c1_62, %c4_63] : memref<8x8xf32, #tpu.memory_space<smem>>
    %113 = vector.broadcast %112 : f32 to vector<8x128xf32>
    %114 = arith.mulf %3, %113 : vector<8x128xf32>
    %115 = arith.addf %111, %114 : vector<8x128xf32>
    %c2_64 = arith.constant 2 : index
    %c4_65 = arith.constant 4 : index
    %116 = memref.load %arg1[%c2_64, %c4_65] : memref<8x8xf32, #tpu.memory_space<smem>>
    %117 = vector.broadcast %116 : f32 to vector<8x128xf32>
    %118 = arith.mulf %5, %117 : vector<8x128xf32>
    %119 = arith.addf %115, %118 : vector<8x128xf32>
    %c3_66 = arith.constant 3 : index
    %c4_67 = arith.constant 4 : index
    %120 = memref.load %arg1[%c3_66, %c4_67] : memref<8x8xf32, #tpu.memory_space<smem>>
    %121 = vector.broadcast %120 : f32 to vector<8x128xf32>
    %122 = arith.mulf %7, %121 : vector<8x128xf32>
    %123 = arith.addf %119, %122 : vector<8x128xf32>
    %c4_68 = arith.constant 4 : index
    %c4_69 = arith.constant 4 : index
    %124 = memref.load %arg1[%c4_68, %c4_69] : memref<8x8xf32, #tpu.memory_space<smem>>
    %125 = vector.broadcast %124 : f32 to vector<8x128xf32>
    %126 = arith.mulf %9, %125 : vector<8x128xf32>
    %127 = arith.addf %123, %126 : vector<8x128xf32>
    %c5_70 = arith.constant 5 : index
    %c4_71 = arith.constant 4 : index
    %128 = memref.load %arg1[%c5_70, %c4_71] : memref<8x8xf32, #tpu.memory_space<smem>>
    %129 = vector.broadcast %128 : f32 to vector<8x128xf32>
    %130 = arith.addf %127, %129 : vector<8x128xf32>
    %cst_72 = arith.constant 0.000000e+00 : f32
    %131 = vector.broadcast %cst_72 : f32 to vector<8x128xf32>
    %132 = arith.minimumf %130, %131 : vector<8x128xf32>
    %133 = arith.addf %108, %132 : vector<8x128xf32>
    %c7 = arith.constant 7 : index
    %c0_73 = arith.constant 0 : index
    %134 = memref.load %arg1[%c7, %c0_73] : memref<8x8xf32, #tpu.memory_space<smem>>
    %135 = vector.broadcast %134 : f32 to vector<8x128xf32>
    %136 = arith.addf %133, %135 : vector<8x128xf32>
    %137 = arith.negf %136 : vector<8x128xf32>
    %138 = math.exp %137 : vector<8x128xf32>
    %cst_74 = arith.constant 1.000000e+00 : f32
    %139 = vector.broadcast %cst_74 : f32 to vector<8x128xf32>
    %140 = arith.addf %139, %138 : vector<8x128xf32>
    %141 = arith.divf %139, %140 : vector<8x128xf32>
    %c0_75 = arith.constant 0 : index
    %c0_76 = arith.constant 0 : index
    %142 = vector.load %arg3[%c0_75, %c0_76] : memref<8x128xf32, #tpu.memory_space<vmem>>, vector<8x128xf32>
    tpu.vector_store %arg3[%c0_75, %c0_76], %141 {strides = array<i32>} : memref<8x128xf32, #tpu.memory_space<vmem>>, vector<8x128xf32>,
    return
  }
  func.func @transform_0(%arg0: i32) -> (i32, i32) {
    %c0_i32 = arith.constant 0 : i32
    %c0_i32_0 = arith.constant 0 : i32
    %c0_i32_1 = arith.constant 0 : i32
    return %c0_i32, %c0_i32_0 : i32, i32
  }
  func.func @transform_1(%arg0: i32) -> (i32, i32, i32) {
    %c0_i32 = arith.constant 0 : i32
    %c0_i32_0 = arith.constant 0 : i32
    %c0_i32_1 = arith.constant 0 : i32
    return %c0_i32, %c0_i32_0, %arg0 : i32, i32, i32
  }
  func.func @transform_2(%arg0: i32) -> (i32, i32) {
    %c0_i32 = arith.constant 0 : i32
    %c0_i32_0 = arith.constant 0 : i32
    return %c0_i32, %arg0 : i32, i32
  }
}

</mosaic_0001>

<bundles_post_ra>
// kernel: patient_risk_forward.1
= control target key start
LH: loop header
LB: loop body
LE: loop exit
PB: predicated region body
PF: predicated region fallthrough
CT: control target
= control target key end

     0   :  { %7 = vsyncpa [#allocation3], 0  ;;  %s234_s12 = smov [#allocation2]   ;;  %s321_s0 = inlined_call_operand.vmem [shape: f32[8,8], index: 0, kind: input, shape index: {}]   ;;  %s322_s1 = inlined_call_operand.vmem [shape: f32[5,8,128], index: 1, kind: input, shape index: {}]   ;;  %s323_s2 = inlined_call_operand.vmem [shape: f32[8,128], index: 2, kind: output, shape index: {}]  }
   0x1   :  { %s13_s11 = sshll.u32 %s321_s0, 4  ;;  %s14_s11 = int_to_ptr.vmem [resolvable:$true] %s13_s11 }
   0x2   :  { %16 = dma.vmem_to_smem %s14_s11, 128, %s234_s12, [#allocation3]  }
   0x3   :  { %232 = dma.done.wait [#allocation3], 128  }
   0x4   :  { %233 = vsyncadd [#allocation3], 4294967168 }
   0x5   :  { %23 = sfence }
   0x6   :  { %s33_s13 = sld [smem:[#allocation2]]  ;;  %v256_v0 = vld [vmem:[%s322_s1] sm:$0xff]  ;;  %v263_v1 = vld [vmem:[%s322_s1 + $0x8] sm:$0xff]  ;;  %v270_v2 = vld [vmem:[%s322_s1 + $0x10] sm:$0xff] }
   0x7   :  { %s184_s14 = sld [smem:[#allocation2 + $0x80]]  ;;  %v278_v9 = vld [vmem:[%s322_s1 + $0x18] sm:$0xff]  ;;  %v287_v17 = vld [vmem:[%s322_s1 + $0x20] sm:$0xff] }
   0x8   :  { %s185_s15 = sld [smem:[#allocation2 + $0x100]] }
   0x9   :  { %s186_s16 = sld [smem:[#allocation2 + $0x180]] }
   0xa   :  { %s258_s19 = sld [smem:[#allocation2 + $0x200]] }
   0xb   :  { %s265_s0 = sld [smem:[#allocation2 + $0x280]] }
   0xc   :  { %v34_v3 = vstv %s33_s13  ;;  %s189_s24 = sld [smem:[#allocation2 + $0x1]] }
   0xd   :  { %v35_v4 = vmul.f32 %v34_v3, %v256_v0  ;;  %v37_v5 = vstv %s184_s14  ;;  %s190_s25 = sld [smem:[#allocation2 + $0x81]] }
   0xe   :  { %v38_v6 = vmul.f32 %v263_v1, %v37_v5  ;;  %v41_v7 = vstv %s185_s15  ;;  %s191_s26 = sld [smem:[#allocation2 + $0x101]] }
   0xf   :  { %v42_v8 = vmul.f32 %v270_v2, %v41_v7  ;;  %s192_s27 = sld [smem:[#allocation2 + $0x181]]  ;;  %v45_v11 = vstv %s186_s16 }
  0x10   :  { %v39_v10 = vadd.f32 %v38_v6, %v35_v4  ;;  %s193_s30 = sld [smem:[#allocation2 + $0x201]]  ;;  %v46_v14 = vmul.f32 %v278_v9, %v45_v11  ;;  %v49_v18 = vstv %s258_s19 }
  0x11   :  { %s280_s3 = sld [smem:[#allocation2 + $0x281]]  ;;  %v50_v27 = vmul.f32 %v287_v17, %v49_v18  ;;  %v53_v33 = vstv %s265_s0 }
  0x12   :  { %v57_v12 = vstv %s189_s24  ;;  %s195_s4 = sld [smem:[#allocation2 + $0x2]]  ;;  %v43_v13 = vadd.f32 %v42_v8, %v39_v10 }
  0x13   :  { %v58_v15 = vmul.f32 %v57_v12, %v256_v0  ;;  %v60_v16 = vstv %s190_s25  ;;  %s196_s5 = sld [smem:[#allocation2 + $0x82]] }
  0x14   :  { %v61_v19 = vmul.f32 %v263_v1, %v60_v16  ;;  %v64_v20 = vstv %s191_s26  ;;  %s197_s8 = sld [smem:[#allocation2 + $0x102]]  ;;  %v47_v26 = vadd.f32 %v46_v14, %v43_v13 }
  0x15   :  { %v65_v21 = vmul.f32 %v270_v2, %v64_v20  ;;  %v68_v22 = vstv %s192_s27  ;;  %s198_s9 = sld [smem:[#allocation2 + $0x182]] }
  0x16   :  { %v62_v23 = vadd.f32 %v61_v19, %v58_v15  ;;  %v69_v24 = vmul.f32 %v278_v9, %v68_v22  ;;  %v72_v25 = vstv %s193_s30  ;;  %s199_s10 = sld [smem:[#allocation2 + $0x202]]  ;;  %v51_v37 = vadd.f32 %v50_v27, %v47_v26 }
  0x17   :  { %s294_s1 = sld [smem:[#allocation2 + $0x282]]  ;;  %v73_v29 = vmul.f32 %v287_v17, %v72_v25  ;;  %v76_v38 = vstv %s280_s3 }
  0x18   :  { %v66_v28 = vadd.f32 %v65_v21, %v62_v23  ;;  %v81_v30 = vstv %s195_s4  ;;  %s201_s11 = sld [smem:[#allocation2 + $0x3]]  ;;  %v54_v48 = vadd.f32 %v53_v33, %v51_v37 }
  0x19   :  { %v82_v31 = vmul.f32 %v81_v30, %v256_v0  ;;  %v84_v32 = vstv %s196_s5  ;;  %s202_s12 = sld [smem:[#allocation2 + $0x83]] }
  0x1a   :  { %v70_v34 = vadd.f32 %v69_v24, %v66_v28  ;;  %v85_v35 = vmul.f32 %v263_v1, %v84_v32  ;;  %v88_v36 = vstv %s197_s8  ;;  %s203_s13 = sld [smem:[#allocation2 + $0x103]]  ;;  %v55_v61 = vmax.f32 %v54_v48, 0.0 }
  0x1b   :  { %v89_v39 = vmul.f32 %v270_v2, %v88_v36  ;;  %v92_v40 = vstv %s198_s9  ;;  %s204_s14 = sld [smem:[#allocation2 + $0x183]] }
  0x1c   :  { %v74_v41 = vadd.f32 %v73_v29, %v70_v34  ;;  %v86_v42 = vadd.f32 %v85_v35, %v82_v31  ;;  %v93_v43 = vmul.f32 %v278_v9, %v92_v40  ;;  %v96_v44 = vstv %s199_s10  ;;  %s205_s15 = sld [smem:[#allocation2 + $0x203]] }
  0x1d   :  { %s303_s16 = sld [smem:[#allocation2 + $0x283]]  ;;  %v97_v46 = vmul.f32 %v287_v17, %v96_v44  ;;  %v100_v55 = vstv %s294_s1 }
  0x1e   :  { %v90_v45 = vadd.f32 %v89_v39, %v86_v42  ;;  %v105_v47 = vstv %s201_s11  ;;  %s207_s17 = sld [smem:[#allocation2 + $0x4]]  ;;  %v77_v49 = vadd.f32 %v76_v38, %v74_v41 }
  0x1f   :  { %v106_v50 = vmul.f32 %v105_v47, %v256_v0  ;;  %v108_v51 = vstv %s202_s12  ;;  %s208_s18 = sld [smem:[#allocation2 + $0x84]] }
  0x20   :  { %v94_v52 = vadd.f32 %v93_v43, %v90_v45  ;;  %v109_v53 = vmul.f32 %v263_v1, %v108_v51  ;;  %v112_v54 = vstv %s203_s13  ;;  %s209_s19 = sld [smem:[#allocation2 + $0x104]]  ;;  %v78_v62 = vmax.f32 %v77_v49, 0.0 }
  0x21   :  { %v113_v56 = vmul.f32 %v270_v2, %v112_v54  ;;  %v116_v57 = vstv %s204_s14  ;;  %s210_s20 = sld [smem:[#allocation2 + $0x184]] }
  0x22   :  { %v98_v58 = vadd.f32 %v97_v46, %v94_v52  ;;  %v110_v59 = vadd.f32 %v109_v53, %v106_v50  ;;  %v117_v60 = vmul.f32 %v278_v9, %v116_v57  ;;  %s211_s21 = sld [smem:[#allocation2 + $0x204]]  ;;  %v120_v63 = vstv %s205_s15 }
  0x23   :  { %v121_v5 = vmul.f32 %v287_v17, %v120_v63  ;;  %s212_s0 = sld [smem:[#allocation2 + $0x284]]  ;;  %v79_v13 = vadd.f32 %v78_v62, %v55_v61  ;;  %v124_v14 = vstv %s303_s16 }
  0x24   :  { %v101_v3 = vadd.f32 %v100_v55, %v98_v58  ;;  %v114_v4 = vadd.f32 %v113_v56, %v110_v59  ;;  %v129_v6 = vstv %s207_s17  ;;  %s213_s22 = sld [smem:[#allocation2 + $0x380]] }
  0x25   :  { %v130_v7 = vmul.f32 %v129_v6, %v256_v0  ;;  %v132_v8 = vstv %s208_s18 }
  0x26   :  { %v118_v10 = vadd.f32 %v117_v60, %v114_v4  ;;  %v133_v11 = vmul.f32 %v263_v1, %v132_v8  ;;  %v136_v12 = vstv %s209_s19  ;;  %v102_v18 = vmin.f32 %v101_v3, 0.0 }
  0x27   :  { %v137_v15 = vmul.f32 %v270_v2, %v136_v12  ;;  %v140_v16 = vstv %s210_s20 }
  0x28   :  { %v122_v19 = vadd.f32 %v121_v5, %v118_v10  ;;  %v134_v20 = vadd.f32 %v133_v11, %v130_v7  ;;  %v141_v21 = vmul.f32 %v278_v9, %v140_v16  ;;  %v144_v22 = vstv %s211_s21 }
  0x29   :  { %v145_v0 = vmul.f32 %v287_v17, %v144_v22  ;;  %v103_v25 = vadd.f32 %v102_v18, %v79_v13  ;;  %v148_v27 = vstv %s212_s0 }
  0x2a   :  { %v125_v23 = vadd.f32 %v124_v14, %v122_v19  ;;  %v138_v24 = vadd.f32 %v137_v15, %v134_v20  ;;  %v153_v31 = vstv %s213_s22 }
  0x2c   :  { %v126_v26 = vmin.f32 %v125_v23, 0.0  ;;  %v142_v1 = vadd.f32 %v141_v21, %v138_v24 }
  0x2e   :  { %v146_v28 = vadd.f32 %v145_v0, %v142_v1  ;;  %v127_v29 = vadd.f32 %v126_v26, %v103_v25 }
  0x30   :  { %v149_v30 = vadd.f32 %v148_v27, %v146_v28 }
  0x32   :  { %v150_v2 = vmin.f32 %v149_v30, 0.0 }
  0x34   :  { %v151_v32 = vadd.f32 %v150_v2, %v127_v29 }
  0x36   :  { %v154_v33 = vadd.f32 %v153_v31, %v151_v32 }
  0x38   :  { %v214_v34 = vmul.f32 -1.442695, %v154_v33 }
  0x3a   :  { %216 = vpow2.f32 %v214_v34 }
  0x40   :  { %v217_v9 = vpop.eup %216 }
  0x41   :  { %v158_v35 = vadd.f32 1.0, %v217_v9 }
  0x43   :  { %218 = vrcp.f32 %v158_v35  ;;  %v170_v17 = vand.u32 2147483648, %v158_v35  ;;  %vm164_vm0 = vweird.f32 %v158_v35  ;;  %v168_v39 = vand.u32 2147483647, %v158_v35 }
  0x45   :  { %v171_v41 = vor.u32 1.1754944e-38, %v170_v17  ;;  %vm169_vm3 = vcmp.eq.f32.partialorder %v168_v39, 8.507059e+37 }
  0x49   :  { %v219_v36 = vpop.eup %218 }
  0x4a   :  { %v160_v37 = vmul.f32 %v219_v36, %v158_v35  ;;  %vm165_vm1 = vweird.f32 %v219_v36 }
  0x4b   :  { %vm166_vm2 = vmor %vm164_vm0, %vm165_vm1 }
  0x4c   :  { %v161_v38 = vsub.f32 1.0, %v160_v37 }
  0x4e   :  { %v162_v40 = vmul.f32 %v219_v36, %v161_v38 }
  0x50   :  { %v163_v42 = vadd.f32 %v219_v36, %v162_v40 }
  0x52   :  { %v167_v43 = vsel %vm166_vm2, %v219_v36, %v163_v42 }
  0x53   :  { %v172_v44 = vsel %vm169_vm3, %v171_v41, %v167_v43 }
  0x54   :  { %174 = vst [vmem:[%s323_s2] sm:$0xff] %v172_v44 }
  0x55   :  { %179 = vsyncpa [#allocation3], 1 }

</bundles_post_ra>
